<compile_context>
chip_gen: v7x
topology: tpu7x:2x2x1
jax: 0.10.0
libtpu: 0.0.40
codegen_flags: <defaults>
</compile_context>

<pallas_src>
import jax
import jax.numpy as jnp
from jax.experimental import pallas as pl
from jax.experimental.pallas import tpu as pltpu


def _gcn_block_kernel(a_ref, x_ref, s_ref, wx_ref, ws_ref, b_ref, o_ref):
    # One grid step == one batch element.
    #   a_ref : (N, N)  normalized adjacency (same block every step -> resident)
    #   x_ref : (N, 1)  X[b] as a column
    #   s_ref : (N, G)  state[b]
    #   wx_ref: (1, O)  W[:, 0] as a row   (weight column for the X feature)
    #   ws_ref: (G, O)  W[:, 1:].T
    #   b_ref : (1, O)  bias
    #   o_ref : (N, O)  per-batch output block
    a = a_ref[...]
    # Fused x_s build + dense layer (reassociated):  z = x_s_b @ W^T
    z = x_ref[...] * wx_ref[...] + jnp.dot(
        s_ref[...], ws_ref[...], preferred_element_type=jnp.float32)      # (N, O) f32
    # Graph diffusion: y_b = A_hat @ z + bias
    y = jnp.dot(a, z.astype(a.dtype),
                preferred_element_type=jnp.float32) + b_ref[...]
    o_ref[...] = y.astype(o_ref.dtype)


def gcn_block_forward(A_hat, X, state, weight, bias, *, mxu_dtype=None):
    """Pallas forward for GCNBlock.

    A_hat: (N, N), X: (B, N), state: (B, N, G), weight: (O, G+1), bias: (O,)
    Returns (B, N*O), matching the torch module (up to f32 reassociation).
    mxu_dtype: optionally cast the matmul inputs (A_hat, state, w_s) to e.g.
      jnp.bfloat16 for the v6e/v7x MXU; accumulation stays f32.
    """
    B, N = X.shape
    G = state.shape[2]
    O = weight.shape[0]

    # Keep per-batch row blocks sublane-aligned so stores stay unmasked.
    Np = N
    if N % 8:
        pad = 8 - N % 8
        Np = N + pad
        A_hat = jnp.pad(A_hat, ((0, pad), (0, pad)))
        X = jnp.pad(X, ((0, 0), (0, pad)))
        state = jnp.pad(state, ((0, 0), (0, pad), (0, 0)))

    # Free (layout-preserving) reshapes + tiny parameter slices.  No x_s concat,
    # no feature padding, no extra HBM intermediate.
    x_col = X.reshape(B * Np, 1)
    s_flat = state.reshape(B * Np, G)
    w_x = weight[:, :1].T            # (1, O)
    w_s = weight[:, 1:].T            # (G, O)
    b_row = bias.reshape(1, O)

    if mxu_dtype is not None:        # v6e/v7x large-N option; demo keeps f32
        A_hat = A_hat.astype(mxu_dtype)
        s_flat = s_flat.astype(mxu_dtype)
        w_s = w_s.astype(mxu_dtype)

    out = pl.pallas_call(
        _gcn_block_kernel,
        out_shape=jax.ShapeDtypeStruct((B * Np, O), X.dtype),
        grid=(B,),
        in_specs=[
            pl.BlockSpec((Np, Np), lambda b: (0, 0)),   # A_hat (resident)
            pl.BlockSpec((Np, 1), lambda b: (b, 0)),    # X[b]
            pl.BlockSpec((Np, G), lambda b: (b, 0)),    # state[b]
            pl.BlockSpec((1, O), lambda b: (0, 0)),     # w_x (resident)
            pl.BlockSpec((G, O), lambda b: (0, 0)),     # w_s (resident)
            pl.BlockSpec((1, O), lambda b: (0, 0)),     # bias (resident)
        ],
        out_specs=pl.BlockSpec((Np, O), lambda b: (b, 0)),
        compiler_params=pltpu.CompilerParams(
            dimension_semantics=("parallel",)),         # v7x: shard batch over 2 TCs
    )(A_hat, x_col, s_flat, w_x, w_s, b_row)

    if Np != N:
        out = out.reshape(B, Np, O)[:, :N, :]
    # Final flatten to (B, N*O): same memory layout as (B*N, O) -> zero-copy.
    return out.reshape(B, N * O)


def gcn_block_reference(A_hat, X, state, weight, bias):
    # Pure-JAX reference mirroring the torch code path exactly.
    B, N = X.shape
    F = state.shape[2] + 1
    O = weight.shape[0]
    xs = jnp.concatenate([X[..., None], state], axis=2)        # (B, N, F)
    x0 = jnp.transpose(xs, (1, 2, 0)).reshape(N, -1)            # (N, F*B)
    x1 = A_hat @ x0                                             # (N, F*B)
    x = jnp.transpose(x1.reshape(N, F, B), (2, 0, 1)).reshape(-1, F)
    x = x @ weight.T + bias                                     # (B*N, O)
    return x.reshape(B, N * O)


if __name__ == "__main__":
    # Small shapes consistent with the module.
    B, N, G, O = 2, 16, 32, 8
    F = G + 1

    key = jax.random.PRNGKey(0)
    k_a, k_x, k_s, k_w, k_b = jax.random.split(key, 5)

    # Deterministic synthetic inputs / parameters.
    A_raw = jax.random.uniform(k_a, (N, N), dtype=jnp.float32)
    A_sym = (A_raw + A_raw.T) * 0.5 + jnp.eye(N, dtype=jnp.float32)
    d = jnp.sum(A_sym, axis=1)
    A_hat = A_sym / jnp.sqrt(d[:, None] * d[None, :])           # normalized adjacency

    X = jax.random.normal(k_x, (B, N), dtype=jnp.float32)
    state = jax.random.normal(k_s, (B, N, G), dtype=jnp.float32)

    bound = 1.0 / (F ** 0.5)
    weight = jax.random.uniform(k_w, (O, F), minval=-bound, maxval=bound,
                                dtype=jnp.float32)
    bias = jax.random.uniform(k_b, (O,), minval=-bound, maxval=bound,
                              dtype=jnp.float32)

    fwd = jax.jit(gcn_block_forward)
    out = fwd(A_hat, X, state, weight, bias)
    out = jax.block_until_ready(out)

    ref = gcn_block_reference(A_hat, X, state, weight, bias)
    assert out.shape == (B, N * O)
    assert jnp.allclose(out, ref, atol=1e-5, rtol=1e-5), "mismatch vs reference"

    print("KERNEL_OK")
</pallas_src>

<mosaic_0001>
module attributes {stable_mosaic.version = 11 : i64} {
  func.func @_gcn_block_kernel(%arg0: i32, %arg1: memref<16x16xf32, #tpu.memory_space<vmem>>, %arg2: memref<16x1xf32, #tpu.memory_space<vmem>>, %arg3: memref<16x32xf32, #tpu.memory_space<vmem>>, %arg4: memref<1x8xf32, #tpu.memory_space<vmem>>, %arg5: memref<32x8xf32, #tpu.memory_space<vmem>>, %arg6: memref<1x8xf32, #tpu.memory_space<vmem>>, %arg7: memref<16x8xf32, #tpu.memory_space<vmem>>) attributes {dimension_semantics = [#tpu.dimension_semantics<parallel>], iteration_bounds = array<i64: 2>, scalar_prefetch = 0 : i64, scratch_operands = 0 : i64, tpu.core_type = #tpu.core_type<tc>, window_params = [{pipeline_mode = #tpu.pipeline_mode<synchronous>, transform_indices = @transform_0, window_bounds = array<i64: 16, 16>}, {transform_indices = @transform_1, window_bounds = array<i64: 16, 1>}, {transform_indices = @transform_2, window_bounds = array<i64: 16, 32>}, {pipeline_mode = #tpu.pipeline_mode<synchronous>, transform_indices = @transform_3, window_bounds = array<i64: 1, 8>}, {pipeline_mode = #tpu.pipeline_mode<synchronous>, transform_indices = @transform_4, window_bounds = array<i64: 32, 8>}, {pipeline_mode = #tpu.pipeline_mode<synchronous>, transform_indices = @transform_5, window_bounds = array<i64: 1, 8>}, {transform_indices = @transform_6, window_bounds = array<i64: 16, 8>}]} {
    %c0 = arith.constant 0 : index
    %c0_0 = arith.constant 0 : index
    %0 = vector.load %arg1[%c0, %c0_0] : memref<16x16xf32, #tpu.memory_space<vmem>>, vector<16x16xf32>
    %c0_1 = arith.constant 0 : index
    %c0_2 = arith.constant 0 : index
    %1 = vector.load %arg2[%c0_1, %c0_2] : memref<16x1xf32, #tpu.memory_space<vmem>>, vector<16x1xf32>
    %c0_3 = arith.constant 0 : index
    %c0_4 = arith.constant 0 : index
    %2 = vector.load %arg4[%c0_3, %c0_4] : memref<1x8xf32, #tpu.memory_space<vmem>>, vector<1x8xf32>
    %3 = vector.broadcast %1 : vector<16x1xf32> to vector<16x8xf32>
    %4 = vector.broadcast %2 : vector<1x8xf32> to vector<16x8xf32>
    %5 = arith.mulf %3, %4 : vector<16x8xf32>
    %c0_5 = arith.constant 0 : index
    %c0_6 = arith.constant 0 : index
    %6 = vector.load %arg3[%c0_5, %c0_6] : memref<16x32xf32, #tpu.memory_space<vmem>>, vector<16x32xf32>
    %c0_7 = arith.constant 0 : index
    %c0_8 = arith.constant 0 : index
    %7 = vector.load %arg5[%c0_7, %c0_8] : memref<32x8xf32, #tpu.memory_space<vmem>>, vector<32x8xf32>
    %cst = arith.constant dense<0.000000e+00> : vector<16x8xf32>
    %8 = tpu.matmul %6, %7, %cst {dimension_numbers = #tpu.dot_dimension_numbers<[1], [0], [0], [1], [0, 0, 1, 1], [], []>} : vector<16x32xf32>, vector<32x8xf32>, vector<16x8xf32> -> vector<16x8xf32>
    %9 = arith.addf %5, %8 : vector<16x8xf32>
    %cst_9 = arith.constant dense<0.000000e+00> : vector<16x8xf32>
    %10 = tpu.matmul %0, %9, %cst_9 {dimension_numbers = #tpu.dot_dimension_numbers<[1], [0], [0], [1], [0, 0, 1, 1], [], []>} : vector<16x16xf32>, vector<16x8xf32>, vector<16x8xf32> -> vector<16x8xf32>
    %c0_10 = arith.constant 0 : index
    %c0_11 = arith.constant 0 : index
    %11 = vector.load %arg6[%c0_10, %c0_11] : memref<1x8xf32, #tpu.memory_space<vmem>>, vector<1x8xf32>
    %12 = vector.broadcast %11 : vector<1x8xf32> to vector<16x8xf32>
    %13 = arith.addf %10, %12 : vector<16x8xf32>
    %c0_12 = arith.constant 0 : index
    %c0_13 = arith.constant 0 : index
    %14 = vector.load %arg7[%c0_12, %c0_13] : memref<16x8xf32, #tpu.memory_space<vmem>>, vector<16x8xf32>
    tpu.vector_store %arg7[%c0_12, %c0_13], %13 {strides = array<i32>} : memref<16x8xf32, #tpu.memory_space<vmem>>, vector<16x8xf32>,
    return
  }
  func.func @transform_0(%arg0: i32) -> (i32, i32) {
    %c0_i32 = arith.constant 0 : i32
    %c0_i32_0 = arith.constant 0 : i32
    %c0_i32_1 = arith.constant 0 : i32
    return %c0_i32, %c0_i32_0 : i32, i32
  }
  func.func @transform_1(%arg0: i32) -> (i32, i32) {
    %c0_i32 = arith.constant 0 : i32
    %c0_i32_0 = arith.constant 0 : i32
    return %arg0, %c0_i32 : i32, i32
  }
  func.func @transform_2(%arg0: i32) -> (i32, i32) {
    %c0_i32 = arith.constant 0 : i32
    %c0_i32_0 = arith.constant 0 : i32
    return %arg0, %c0_i32 : i32, i32
  }
  func.func @transform_3(%arg0: i32) -> (i32, i32) {
    %c0_i32 = arith.constant 0 : i32
    %c0_i32_0 = arith.constant 0 : i32
    %c0_i32_1 = arith.constant 0 : i32
    return %c0_i32, %c0_i32_0 : i32, i32
  }
  func.func @transform_4(%arg0: i32) -> (i32, i32) {
    %c0_i32 = arith.constant 0 : i32
    %c0_i32_0 = arith.constant 0 : i32
    %c0_i32_1 = arith.constant 0 : i32
    return %c0_i32, %c0_i32_0 : i32, i32
  }
  func.func @transform_5(%arg0: i32) -> (i32, i32) {
    %c0_i32 = arith.constant 0 : i32
    %c0_i32_0 = arith.constant 0 : i32
    %c0_i32_1 = arith.constant 0 : i32
    return %c0_i32, %c0_i32_0 : i32, i32
  }
  func.func @transform_6(%arg0: i32) -> (i32, i32) {
    %c0_i32 = arith.constant 0 : i32
    %c0_i32_0 = arith.constant 0 : i32
    return %arg0, %c0_i32 : i32, i32
  }
}

</mosaic_0001>

<bundles_post_ra>
// kernel: gcn_block_forward.1
= control target key start
LH: loop header
LB: loop body
LE: loop exit
PB: predicated region body
PF: predicated region fallthrough
CT: control target
= control target key end

     0   :  { %s663_s21 = smov 0   ;;  %s712_s0 = inlined_call_operand.vmem [shape: f32[16,16], index: 0, kind: input, shape index: {}]   ;;  %s713_s1 = inlined_call_operand.vmem [shape: f32[32,1], index: 1, kind: input, shape index: {}]   ;;  %s714_s2 = inlined_call_operand.vmem [shape: f32[32,32], index: 2, kind: input, shape index: {}]   ;;  %s715_s3 = inlined_call_operand.vmem [shape: f32[1,8], index: 3, kind: input, shape index: {}]   ;;  %s716_s4 = inlined_call_operand.vmem [shape: f32[32,8], index: 4, kind: input, shape index: {}]   ;;  %s717_s5 = inlined_call_operand.vmem [shape: f32[1,8], index: 5, kind: input, shape index: {}]   ;;  %s718_s6 = inlined_call_operand.vmem [shape: f32[32,8], index: 6, kind: output, shape index: {}]  }
   0x1 LB: > { %s550_s22 = sadd.s32 4294967295, %s625_s21   ;;  %p554_p0 = scmp.ge.s32.totalorder %s625_s21, 1  ;;  %s625_s21 = sphi %s663_s21, %s16_s21  }
   0x2   : > { %p224_p1 = scmp.lt.s32.totalorder %s625_s21, 3 }
   0x4   : > { %p225_p2 = pnand %p554_p0, %p224_p1 }
   0x5   : > { %v302_v0 = vld [vmem:[%s716_s4] sm:$0xff] (!%p225_p2)  ;;  %v303_v1 = vld [vmem:[%s716_s4 + $0x8] sm:$0xff] (!%p225_p2)  ;;  %v304_v2 = vld [vmem:[%s716_s4 + $0x10] sm:$0xff] (!%p225_p2)  ;;  %s555_s29 = sshll.u32 (!%p225_p2), %s550_s22, 1  ;;  %v627_v5 = vmov (!%p225_p2), 0   ;;  %vm306_vm0 = vcmask (!%p225_p2), 261120  }
   0x6   : > { %228 = sbr.rel (%p225_p2) target bundleno = 455 (0x1c7), region = 44  ;;  %v597_v3 = vpack.c.bf16 (!%p225_p2), %v303_v1, %v302_v0  ;;  %v305_v4 = vld [vmem:[%s716_s4 + $0x18] sm:$0xff] (!%p225_p2)  ;;  %p260_p3 = scmp.lt.s32.totalorder (!%p225_p2), %s555_s29, 3  ;;  %618 = vset.pattern.permute.xlu0 (!%p225_p2), %v627_v5  ;;  %v277_v11 = vld [vmem:[%s712_s0] sm:$0xff] (!%p225_p2)  ;;  %vm397_vm1 = vcmask (!%p225_p2), 130048   ;;  %v278_v22 = vld [vmem:[%s712_s0 + $0x8] sm:$0xff] (!%p225_p2) }
   0x7   : > { %v601_v6 = vpack.c.bf16 (!%p225_p2), %v305_v4, %v304_v2  ;;  %594 = vmatprep.mubr.msk.f32.mxu1 (!%p225_p2), %vm397_vm1, %v277_v11  ;;  %v561_v13 = vld [vmem:[%s715_s3] ss:$0 sm:$0xff] (!%p225_p2)  ;;  %vm479_vm2 = vcmask (!%p225_p2), 64512  }
   0x8   : > { %598 = vmatprep.subr.bf16.mxu0 (!%p225_p2), %v597_v3  ;;  %v564_v23 = vld [vmem:[%s717_s5] ss:$0 sm:$0xff] (!%p225_p2) }
   0x9   : > { %600 = vmatpush3.bf16.msra.mxu0 (!%p225_p2), %v597_v3 }
   0xa   : > { %602 = vmatprep.subr.bf16.mxu0 (!%p225_p2), %v601_v6 }
   0xd   : > { %s720_s29 = smov (!%p260_p3, %s555_s29), 3  ;;  %604 = vmatpush3.bf16.msra.mxu0 %v601_v6 }
   0xe   : > { %s683_s8 = sshll.u32 %s720_s29, 3 }
   0xf   : > { %s269_s11 = scalar_lea.vmem %s714_s2, %s683_s8  ;;  %s263_s14 = scalar_lea.vmem %s713_s1, %s683_s8 }
  0x10   : > { %v300_v7 = vld [vmem:[%s269_s11] sm:$0xff]  ;;  %v301_v8 = vld [vmem:[%s269_s11 + $0x8] sm:$0xff]  ;;  %s275_s26 = scalar_lea.vmem %s718_s6, %s683_s8 }
  0x11   : > { %587 = vmatprep.mubr.msk.f32.mxu0 %vm306_vm0, %v300_v7  ;;  %v279_v9 = vld [vmem:[%s263_s14] sm:$0xff]  ;;  %v280_v10 = vld [vmem:[%s263_s14 + $0x8] sm:$0xff] }
  0x12   : > { %284 = vperm.xlu0 %618, %v279_v9   ;;  %588 = vmatmul.mubr.msk.f32.vlgmr.msra.gmra.mrb[0].mxu0 %vm306_vm0, %v301_v8 }
  0x16   : > { %289 = vperm.xlu0 %618, %v280_v10  }
  0x91   : > { %v285_v12 = vpop.permute.xlu0 %284 }
  0x92   : > { %v298_v16 = vmul.f32 %v561_v13, %v285_v12 }
  0x95   : > { %v290_v14 = vpop.permute.xlu0 %289 }
  0x96   : > { %v299_v15 = vmul.f32 %v561_v13, %v290_v14 }
  0xe5   : > { %v589_v17 = vpop.f32.mrb[0].mxu0 }
  0xe6   : > { %v389_v18 = vadd.f32 %v589_v17, %v299_v15  ;;  %v379_v19 = vpop.f32.mrb[1].mxu0 }
  0xe7   : > { %v388_v20 = vadd.f32 %v379_v19, %v298_v16 }
  0xe9   : > { %v605_v21 = vpack.c.bf16 %v389_v18, %v388_v20 }
  0xeb   : > { %606 = vmatprep.subr.bf16.mxu1 %v605_v21 }
  0xec   : > { %608 = vmatpush3.bf16.msra.mxu1 %v605_v21 }
  0xef   : > { %595 = vmatmul.mubr.msk.f32.vlgmr.msra.gmra.mrb[0].mxu1 %vm397_vm1, %v278_v22 }
 0x1c2   : > { %v596_v24 = vpop.f32.mrb[0].mxu1 }
 0x1c3   : > { %v470_v25 = vpop.f32.mrb[1].mxu1  ;;  %v476_v27 = vadd.f32 %v596_v24, %v564_v23 }
 0x1c4   : > { %v471_v26 = vadd.f32 %v564_v23, %v470_v25 }
 0x1c5   : > { %481 = vst.msk [vmem:[%s275_s26 + $0x8] sm:$0xff] %vm479_vm2, %v476_v27 }
 0x1c6   : > { %480 = vst.msk [vmem:[%s275_s26] sm:$0xff] %vm479_vm2, %v471_v26 }
 0x1c7 PF: > { %s16_s21 = sadd.s32 1, %s625_s21  }
 0x1c8   : > { %p13_p4 = scmp.ge.s32.totalorder %s16_s21, 4  }
 0x1ca   :  { %15 = sbr.rel (!%p13_p4) target bundleno = 1 (0x1), region = 77 }

</bundles_post_ra>
